<compile_context>
chip_gen: v6e
topology: v6e:2x2x1
jax: 0.10.0
libtpu: 0.0.40
codegen_flags: <defaults>
</compile_context>

<pallas_src>
import math

import jax
import jax.numpy as jnp
from jax.experimental import pallas as pl
from jax.experimental.pallas import tpu as pltpu


def _round_up(x, m):
    return ((x + m - 1) // m) * m


def _pad2d(x, rows, cols):
    pr, pc = rows - x.shape[0], cols - x.shape[1]
    if pr == 0 and pc == 0:
        return x
    return jnp.pad(x, ((0, pr), (0, pc)))


# ---------------------------------------------------------------------------
# Kernels: one (tm, tn) output tile, accumulated over the K grid axis.
# ---------------------------------------------------------------------------
def _mm_nobias_kernel(a_ref, b_ref, o_ref):
    """f32 output, accumulate directly into the K-resident output block."""
    k = pl.program_id(2)

    @pl.when(k == 0)
    def _():
        o_ref[...] = jnp.zeros_like(o_ref)

    o_ref[...] += jnp.dot(
        a_ref[...], b_ref[...], preferred_element_type=jnp.float32
    )


def _mm_bias_kernel(a_ref, b_ref, bias_ref, o_ref):
    """f32 output, direct accumulation; bias row added in the K epilogue."""
    k = pl.program_id(2)

    @pl.when(k == 0)
    def _():
        o_ref[...] = jnp.zeros_like(o_ref)

    o_ref[...] += jnp.dot(
        a_ref[...], b_ref[...], preferred_element_type=jnp.float32
    )

    @pl.when(k == pl.num_programs(2) - 1)
    def _():
        o_ref[...] += bias_ref[...]


def _mm_nobias_acc_kernel(a_ref, b_ref, o_ref, acc_ref):
    """Narrow (e.g. bf16) output: accumulate in an f32 scratch, cast once."""
    k = pl.program_id(2)

    @pl.when(k == 0)
    def _():
        acc_ref[...] = jnp.zeros_like(acc_ref)

    acc_ref[...] += jnp.dot(
        a_ref[...], b_ref[...], preferred_element_type=jnp.float32
    )

    @pl.when(k == pl.num_programs(2) - 1)
    def _():
        o_ref[...] = acc_ref[...].astype(o_ref.dtype)


# ---------------------------------------------------------------------------
# Tiled matmul over already-padded operands (output stays padded).
# ---------------------------------------------------------------------------
def _matmul_padded(a_p, b_p, bias_p=None, *, tm, tk, tn, out_dtype=jnp.float32):
    """(Mp,Kp) @ (Kp,Np) [+ bias] -> (Mp,Np).  a_p/b_p are bf16, tile-aligned."""
    Mp, Kp = a_p.shape
    Kp2, Np = b_p.shape
    assert Kp == Kp2, (a_p.shape, b_p.shape)
    assert Mp % tm == 0 and Kp % tk == 0 and Np % tn == 0, (Mp, Kp, Np, tm, tk, tn)

    grid = (Mp // tm, Np // tn, Kp // tk)

    a_spec = pl.BlockSpec((tm, tk), lambda i, j, k: (i, k))
    b_spec = pl.BlockSpec((tk, tn), lambda i, j, k: (k, j))
    o_spec = pl.BlockSpec((tm, tn), lambda i, j, k: (i, j))

    scratch_shapes = []
    if out_dtype == jnp.float32:
        if bias_p is None:
            kernel, in_specs, args = _mm_nobias_kernel, [a_spec, b_spec], (a_p, b_p)
        else:
            kernel = _mm_bias_kernel
            in_specs = [a_spec, b_spec, pl.BlockSpec((1, tn), lambda i, j, k: (0, j))]
            args = (a_p, b_p, bias_p)
        out_bytes_per_buf = tm * tn * 4
    else:
        # Narrow output (bf16 intermediate): keep f32 precision in scratch.
        assert bias_p is None
        kernel, in_specs, args = _mm_nobias_acc_kernel, [a_spec, b_spec], (a_p, b_p)
        scratch_shapes = [pltpu.VMEM((tm, tn), jnp.float32)]
        out_bytes_per_buf = tm * tn * 2 + tm * tn * 4  # out tile + acc scratch

    # VMEM budget: double-buffered bf16 input tiles + output tiles (+ bias).
    vmem_needed = 2 * (tm * tk + tk * tn) * 2 + 2 * out_bytes_per_buf + 2 * tn * 4
    vmem_limit = int(min(64 << 20, max(32 << 20, 4 * vmem_needed)))

    return pl.pallas_call(
        kernel,
        out_shape=jax.ShapeDtypeStruct((Mp, Np), out_dtype),
        grid_spec=pltpu.PrefetchScalarGridSpec(
            num_scalar_prefetch=0,
            grid=grid,
            in_specs=in_specs,
            out_specs=o_spec,
            scratch_shapes=scratch_shapes,
        ),
        compiler_params=pltpu.CompilerParams(
            dimension_semantics=("parallel", "parallel", "arbitrary"),
            vmem_limit_bytes=vmem_limit,
        ),
    )(*args)


# ---------------------------------------------------------------------------
# GraphConvolution.forward
# ---------------------------------------------------------------------------
def graph_convolution(adjacency, input_feature, weight, bias=None,
                      *, t_node=256, t_feat=512, t_out=512):
    """adjacency: (N,N), input_feature: (N,F), weight: (F,O), bias: (O,)|None.

    Tile budget (v7x-safe, 64 MiB VMEM/TC): defaults give ~3 MiB of VMEM
    (bf16 inputs, double-buffered) — headroom to grow on v5e/v6e if swept.
    The node tile serves as both matmuls' M tile AND the adjacency K tile so
    the padded bf16 `support` feeds the second matmul directly.
    NOTE(v7x megacore): at deployment sizes keep Np//t_node or Op//t_out >= 2
    so both TensorCores get work along a "parallel" grid axis.
    """
    N = adjacency.shape[0]
    F_in, O = weight.shape
    assert input_feature.shape == (N, F_in)

    # Tile sizes, capped to the (lane/sublane-padded) problem dims.
    tile_node = min(t_node, _round_up(N, 128))
    tile_feat = min(t_feat, _round_up(F_in, 128))
    tile_out = min(t_out, _round_up(O, 128))

    Np = _round_up(N, tile_node)
    Fp = _round_up(F_in, tile_feat)
    Op = _round_up(O, tile_out)

    # bf16 operands (MXU-native on all generations); f32 accumulation in-kernel.
    x_p = _pad2d(input_feature.astype(jnp.bfloat16), Np, Fp)
    w_p = _pad2d(weight.astype(jnp.bfloat16), Fp, Op)
    adj_p = _pad2d(adjacency.astype(jnp.bfloat16), Np, Np)

    # support = X @ W  -- no bias, emitted directly as padded bf16 (f32 scratch
    # accumulation inside the kernel) so it feeds the second matmul with no
    # slice / re-pad / re-cast HBM round trips.
    support_p = _matmul_padded(
        x_p, w_p, None, tm=tile_node, tk=tile_feat, tn=tile_out,
        out_dtype=jnp.bfloat16,
    )

    # output = A @ support (+ bias), f32 output accumulated in place.
    bias_p = None
    if bias is not None:
        bias_p = _pad2d(bias.astype(jnp.float32).reshape(1, O), 1, Op)
    out_p = _matmul_padded(
        adj_p, support_p, bias_p, tm=tile_node, tk=tile_node, tn=tile_out,
        out_dtype=jnp.float32,
    )

    return out_p[:N, :O]


def graph_convolution_ref(adjacency, input_feature, weight, bias=None):
    out = jnp.matmul(adjacency, jnp.matmul(input_feature, weight))
    if bias is not None:
        out = out + bias
    return out


if __name__ == "__main__":
    key = jax.random.PRNGKey(0)
    k1, k2, k3, k4 = jax.random.split(key, 4)

    num_nodes, input_dim, output_dim = 16, 32, 64

    # Row-normalized random adjacency (typical GCN propagation matrix).
    adjacency = jax.random.uniform(k1, (num_nodes, num_nodes), dtype=jnp.float32)
    adjacency = adjacency / jnp.sum(adjacency, axis=1, keepdims=True)

    input_feature = jax.random.normal(k2, (num_nodes, input_dim), dtype=jnp.float32)

    # kaiming_uniform_-style weight init; bias made nonzero so the fused
    # epilogue add is actually exercised.
    bound = math.sqrt(6.0 / input_dim)
    weight = jax.random.uniform(
        k3, (input_dim, output_dim), minval=-bound, maxval=bound, dtype=jnp.float32
    )
    bias = 0.1 * jax.random.normal(k4, (output_dim,), dtype=jnp.float32)

    out = graph_convolution(adjacency, input_feature, weight, bias)
    out = jax.block_until_ready(out)

    ref = graph_convolution_ref(adjacency, input_feature, weight, bias)
    assert out.shape == ref.shape, (out.shape, ref.shape)
    max_err = float(jnp.max(jnp.abs(out - ref)))
    # bf16 operands / f32 accumulation: tolerance covers the operand rounding.
    assert jnp.allclose(out, ref, rtol=2e-2, atol=2e-2), max_err

    print("KERNEL_OK")
</pallas_src>

<mosaic_0001>
module attributes {stable_mosaic.version = 11 : i64} {
  func.func @_mm_nobias_acc_kernel(%arg0: i32, %arg1: i32, %arg2: i32, %arg3: memref<128x128xbf16, #tpu.memory_space<vmem>>, %arg4: memref<128x128xbf16, #tpu.memory_space<vmem>>, %arg5: memref<128x128xbf16, #tpu.memory_space<vmem>>, %arg6: memref<128x128xf32, #tpu.memory_space<vmem>>) attributes {dimension_semantics = [#tpu.dimension_semantics<parallel>, #tpu.dimension_semantics<parallel>, #tpu.dimension_semantics<arbitrary>], iteration_bounds = array<i64: 1, 1, 1>, scalar_prefetch = 0 : i64, scratch_operands = 1 : i64, tpu.core_type = #tpu.core_type<tc>, window_params = [{transform_indices = @transform_0, window_bounds = array<i64: 128, 128>}, {transform_indices = @transform_1, window_bounds = array<i64: 128, 128>}, {transform_indices = @transform_2, window_bounds = array<i64: 128, 128>}]} {
    %c0_i32 = arith.constant 0 : i32
    %0 = arith.cmpi eq, %arg2, %c0_i32 : i32
    %1 = arith.extui %0 : i1 to i32
    %c0_i32_0 = arith.constant 0 : i32
    %2 = arith.cmpi ne, %1, %c0_i32_0 : i32
    scf.if %2 {
      %cst_10 = arith.constant 0.000000e+00 : f32
      %12 = vector.broadcast %cst_10 : f32 to vector<128x128xf32>
      %c0_11 = arith.constant 0 : index
      %c0_12 = arith.constant 0 : index
      %13 = vector.load %arg6[%c0_11, %c0_12] : memref<128x128xf32, #tpu.memory_space<vmem>>, vector<128x128xf32>
      tpu.vector_store %arg6[%c0_11, %c0_12], %12 {strides = array<i32>} : memref<128x128xf32, #tpu.memory_space<vmem>>, vector<128x128xf32>,
    } else {
    }
    %c0 = arith.constant 0 : index
    %c0_1 = arith.constant 0 : index
    %3 = vector.load %arg6[%c0, %c0_1] : memref<128x128xf32, #tpu.memory_space<vmem>>, vector<128x128xf32>
    %c0_2 = arith.constant 0 : index
    %c0_3 = arith.constant 0 : index
    %4 = vector.load %arg3[%c0_2, %c0_3] : memref<128x128xbf16, #tpu.memory_space<vmem>>, vector<128x128xbf16>
    %c0_4 = arith.constant 0 : index
    %c0_5 = arith.constant 0 : index
    %5 = vector.load %arg4[%c0_4, %c0_5] : memref<128x128xbf16, #tpu.memory_space<vmem>>, vector<128x128xbf16>
    %cst = arith.constant dense<0.000000e+00> : vector<128x128xf32>
    %6 = tpu.matmul %4, %5, %cst {dimension_numbers = #tpu.dot_dimension_numbers<[1], [0], [0], [1], [0, 0, 1, 1], [], []>} : vector<128x128xbf16>, vector<128x128xbf16>, vector<128x128xf32> -> vector<128x128xf32>
    %7 = arith.addf %3, %6 : vector<128x128xf32>
    %c0_6 = arith.constant 0 : index
    %c0_7 = arith.constant 0 : index
    %8 = vector.load %arg6[%c0_6, %c0_7] : memref<128x128xf32, #tpu.memory_space<vmem>>, vector<128x128xf32>
    tpu.vector_store %arg6[%c0_6, %c0_7], %7 {strides = array<i32>} : memref<128x128xf32, #tpu.memory_space<vmem>>, vector<128x128xf32>,
    %c0_i32_8 = arith.constant 0 : i32
    %9 = arith.cmpi eq, %arg2, %c0_i32_8 : i32
    %10 = arith.extui %9 : i1 to i32
    %c0_i32_9 = arith.constant 0 : i32
    %11 = arith.cmpi ne, %10, %c0_i32_9 : i32
    scf.if %11 {
      %c0_10 = arith.constant 0 : index
      %c0_11 = arith.constant 0 : index
      %12 = vector.load %arg6[%c0_10, %c0_11] : memref<128x128xf32, #tpu.memory_space<vmem>>, vector<128x128xf32>
      %13 = arith.truncf %12 : vector<128x128xf32> to vector<128x128xbf16>
      %c0_12 = arith.constant 0 : index
      %c0_13 = arith.constant 0 : index
      %14 = vector.load %arg5[%c0_12, %c0_13] : memref<128x128xbf16, #tpu.memory_space<vmem>>, vector<128x128xbf16>
      tpu.vector_store %arg5[%c0_12, %c0_13], %13 {strides = array<i32>} : memref<128x128xbf16, #tpu.memory_space<vmem>>, vector<128x128xbf16>,
    } else {
    }
    return
  }
  func.func @transform_0(%arg0: i32, %arg1: i32, %arg2: i32) -> (i32, i32) {
    %c0_i32 = arith.constant 0 : i32
    return %arg0, %arg2 : i32, i32
  }
  func.func @transform_1(%arg0: i32, %arg1: i32, %arg2: i32) -> (i32, i32) {
    %c0_i32 = arith.constant 0 : i32
    return %arg2, %arg1 : i32, i32
  }
  func.func @transform_2(%arg0: i32, %arg1: i32, %arg2: i32) -> (i32, i32) {
    %c0_i32 = arith.constant 0 : i32
    return %arg0, %arg1 : i32, i32
  }
}

</mosaic_0001>

<bundles_post_ra>
// kernel: tpu_custom_call.1
= control target key start
LH: loop header
LB: loop body
LE: loop exit
PB: predicated region body
PF: predicated region fallthrough
CT: control target
= control target key end

     0   :  { %7 = vsyncpa [#allocation4], 0  ;;  %s735_s0 = inlined_call_operand.hbm [shape: bf16[128,128], index: 0, kind: input, shape index: {}]   ;;  %s736_s1 = inlined_call_operand.hbm [shape: bf16[128,128], index: 1, kind: input, shape index: {}]   ;;  %s737_s2 = inlined_call_operand.hbm [shape: bf16[128,128], index: 2, kind: output, shape index: {}]  }
   0x1   :  { %8 = vsyncpa [#allocation7], 0 }
   0x2   :  { %9 = vsyncpa [#allocation5], 0  ;;  %s697_s9 = smov [#allocation3]  }
   0x3   :  { %s15_s10 = sshll.u32 %s697_s9, 4  ;;  %s16_s10 = int_to_ptr.vmem [resolvable:$true] %s15_s10 }
   0x4   :  { %s639_s11 = scalar_lea.vmem %s16_s10, 1024  ;;  %p644_p1 = scmp.lt.s32.totalorder %s16_s10, %s16_s10 }
   0x5   :  { %p640_p0 = scmp.ne.s32.totalorder %s16_s10, %s639_s11  ;;  %p645_p2 = scmp.lt.s32.totalorder %s639_s11, %s639_s11 }
   0x7   :  { %p646_p3 = por %p645_p2, %p644_p1 }
   0x9   :  { %p647_p4 = pnand %p646_p3, %p640_p0 }
   0xb   :  { %650 = shalt.err (!%p647_p4)
}
   0xc   :  { %s698_s12 = smov 64   ;;  %s699_s13 = smov 4  }
   0xd   :  { %21 = dma.hbm_to_vmem [thread:$0]  %s735_s0, 1024, %s16_s10, [#allocation4], %s698_s12, %s698_s12, %s699_s13  }
   0xe   :  { %s700_s16 = smov [#allocation6]  }
   0xf   :  { %s27_s17 = sshll.u32 %s700_s16, 4  ;;  %s28_s17 = int_to_ptr.vmem [resolvable:$true] %s27_s17 }
  0x10   :  { %s659_s18 = scalar_lea.vmem %s28_s17, 1024  ;;  %p664_p6 = scmp.lt.s32.totalorder %s28_s17, %s28_s17 }
  0x11   :  { %p660_p5 = scmp.ne.s32.totalorder %s28_s17, %s659_s18  ;;  %p665_p7 = scmp.lt.s32.totalorder %s659_s18, %s659_s18 }
  0x13   :  { %p666_p8 = por %p665_p7, %p664_p6 }
  0x15   :  { %p667_p9 = pnand %p666_p8, %p660_p5 }
  0x17   :  { %670 = shalt.err (!%p667_p9)
}
  0x18   :  { %33 = dma.hbm_to_vmem [thread:$0]  %s736_s1, 1024, %s28_s17, [#allocation7], %s698_s12, %s698_s12, %s699_s13  }
  0x19   :  { %691 = dma.done.wait [#allocation4], 1024  }
  0x1a   :  { %692 = vsyncadd [#allocation4], 4294966272 }
  0x1b   :  { %693 = dma.done.wait [#allocation7], 1024  }
  0x1c   :  { %694 = vsyncadd [#allocation7], 4294966272  ;;  %v615_v0 = vld [vmem:[#allocation6 + $0x38] sm:$0xff]   ;;  %v616_v1 = vld [vmem:[#allocation6 + $0x30] sm:$0xff]   ;;  %s701_s0 = smov [#allocation8]  }
  0x1d   :  { %562 = vmatprep.subr.bf16.mxu0 %v615_v0  ;;  %594 = vmatprep.subr.bf16.mxu1 %v615_v0  ;;  %v617_v2 = vld [vmem:[#allocation6 + $0x28] sm:$0xff]   ;;  %v618_v3 = vld [vmem:[#allocation6 + $0x20] sm:$0xff]   ;;  %v619_v6 = vld [vmem:[#allocation6 + $0x18] sm:$0xff]   ;;  %s438_s1 = sshll.u32 %s701_s0, 4  ;;  %s439_s1 = int_to_ptr.vmem [resolvable:$true] %s438_s1 }
  0x1e   :  { %563 = vmatpush3.bf16.msra.mxu0 %v615_v0  ;;  %602 = vmatpush3.bf16.msra.mxu1 %v615_v0  ;;  %v623_v4 = vld [vmem:[#allocation3] sm:$0xff]   ;;  %v620_v7 = vld [vmem:[#allocation6 + $0x10] sm:$0xff]   ;;  %v621_v8 = vld [vmem:[#allocation6 + $0x8] sm:$0xff]   ;;  %s671_s21 = scalar_lea.vmem %s439_s1, 1024  ;;  %p676_p11 = scmp.lt.s32.totalorder %s439_s1, %s439_s1 }
  0x1f   :  { %564 = vmatprep.subr.bf16.mxu0 %v616_v1  ;;  %595 = vmatprep.subr.bf16.mxu1 %v616_v1  ;;  %v624_v5 = vld [vmem:[#allocation3 + $0x20] sm:$0xff]   ;;  %v625_v10 = vld [vmem:[#allocation3 + $0x8] sm:$0xff]   ;;  %v627_v12 = vld [vmem:[#allocation3 + $0x10] sm:$0xff]   ;;  %p672_p10 = scmp.ne.s32.totalorder %s439_s1, %s671_s21  ;;  %p677_p12 = scmp.lt.s32.totalorder %s671_s21, %s671_s21 }
  0x20   :  { %578 = vmatprep.mubr.bf16.mxu0 %v623_v4  ;;  %586 = vmatprep.mubr.bf16.mxu1 %v624_v5  ;;  %v622_v9 = vld [vmem:[#allocation6] sm:$0xff]   ;;  %v626_v11 = vld [vmem:[#allocation3 + $0x28] sm:$0xff]   ;;  %v628_v13 = vld [vmem:[#allocation3 + $0x30] sm:$0xff]  }
  0x21   :  { %v629_v14 = vld [vmem:[#allocation3 + $0x18] sm:$0xff]   ;;  %p678_p13 = por %p677_p12, %p676_p11 }
  0x22   :  { %565 = vmatpush3.bf16.msra.mxu0 %v616_v1  ;;  %603 = vmatpush3.bf16.msra.mxu1 %v616_v1  ;;  %v630_v15 = vld [vmem:[#allocation3 + $0x38] sm:$0xff]  }
  0x23   :  { %566 = vmatprep.subr.bf16.mxu0 %v617_v2  ;;  %596 = vmatprep.subr.bf16.mxu1 %v617_v2  ;;  %p679_p0 = pnand %p678_p13, %p672_p10 }
  0x26   :  { %567 = vmatpush3.bf16.msra.mxu0 %v617_v2  ;;  %604 = vmatpush3.bf16.msra.mxu1 %v617_v2 }
  0x27   :  { %568 = vmatprep.subr.bf16.mxu0 %v618_v3  ;;  %597 = vmatprep.subr.bf16.mxu1 %v618_v3 }
  0x2a   :  { %569 = vmatpush3.bf16.msra.mxu0 %v618_v3  ;;  %605 = vmatpush3.bf16.msra.mxu1 %v618_v3 }
  0x2b   :  { %570 = vmatprep.subr.bf16.mxu0 %v619_v6  ;;  %598 = vmatprep.subr.bf16.mxu1 %v619_v6 }
  0x2e   :  { %571 = vmatpush3.bf16.msra.mxu0 %v619_v6  ;;  %606 = vmatpush3.bf16.msra.mxu1 %v619_v6 }
  0x2f   :  { %572 = vmatprep.subr.bf16.mxu0 %v620_v7  ;;  %599 = vmatprep.subr.bf16.mxu1 %v620_v7 }
  0x32   :  { %573 = vmatpush3.bf16.msra.mxu0 %v620_v7  ;;  %607 = vmatpush3.bf16.msra.mxu1 %v620_v7 }
  0x33   :  { %574 = vmatprep.subr.bf16.mxu0 %v621_v8  ;;  %600 = vmatprep.subr.bf16.mxu1 %v621_v8 }
  0x36   :  { %575 = vmatpush3.bf16.msra.mxu0 %v621_v8  ;;  %608 = vmatpush3.bf16.msra.mxu1 %v621_v8 }
  0x37   :  { %576 = vmatprep.subr.bf16.mxu0 %v622_v9  ;;  %601 = vmatprep.subr.bf16.mxu1 %v622_v9 }
  0x3a   :  { %577 = vmatpush3.bf16.msra.mxu0 %v622_v9  ;;  %609 = vmatpush3.bf16.msra.mxu1 %v622_v9 }
  0x3d   :  { %579 = vmatmul.mubr.bf16.vlgmr.msra.gmra.mxu0 %v625_v10  ;;  %587 = vmatmul.mubr.bf16.vlgmr.msra.gmra.mxu1 %v626_v11 }
  0x3e   :  { %582 = vmatprep.mubr.bf16.mxu0 %v627_v12  ;;  %590 = vmatprep.mubr.bf16.mxu1 %v628_v13 }
  0x45   :  { %583 = vmatmul.mubr.bf16.gmra.mxu0 %v629_v14  ;;  %591 = vmatmul.mubr.bf16.gmra.mxu1 %v630_v15 }
  0xfd   :  { %v580_v16 = vpop.f32.mrf.mxu0  ;;  %v588_v17 = vpop.f32.mrf.mxu1 }
  0xff   :  { %v239_v18 = vpop.f32.mrf.mxu0  ;;  %v271_v19 = vpop.f32.mrf.mxu1 }
 0x101   :  { %v581_v20 = vpop.f32.mrf.mxu0  ;;  %v589_v21 = vpop.f32.mrf.mxu1 }
 0x102   :  { %v507_v22 = vpack.c.bf16 %v581_v20, %v580_v16  ;;  %v527_v23 = vpack.c.bf16 %v589_v21, %v588_v17 }
 0x103   :  { %v242_v24 = vpop.f32.mrf.mxu0  ;;  %v274_v25 = vpop.f32.mrf.mxu1 }
 0x104   :  { %539 = vst [vmem:[#allocation8 + $0x8] sm:$0xff] %v507_v22   ;;  %543 = vst [vmem:[#allocation8 + $0x28] sm:$0xff] %v527_v23   ;;  %v502_v26 = vpack.c.bf16 %v242_v24, %v239_v18  ;;  %v522_v27 = vpack.c.bf16 %v274_v25, %v271_v19 }
 0x105   :  { %v584_v28 = vpop.f32.mrf.mxu0  ;;  %v592_v29 = vpop.f32.mrf.mxu1 }
 0x106   :  { %503 = vst [vmem:[#allocation8] sm:$0xff] %v502_v26   ;;  %542 = vst [vmem:[#allocation8 + $0x20] sm:$0xff] %v522_v27  }
 0x107   :  { %v255_v30 = vpop.f32.mrf.mxu0  ;;  %v287_v31 = vpop.f32.mrf.mxu1 }
 0x109   :  { %v585_v32 = vpop.f32.mrf.mxu0  ;;  %v593_v33 = vpop.f32.mrf.mxu1 }
 0x10a   :  { %v517_v34 = vpack.c.bf16 %v585_v32, %v584_v28  ;;  %v537_v35 = vpack.c.bf16 %v593_v33, %v592_v29 }
 0x10b   :  { %v258_v36 = vpop.f32.mrf.mxu0  ;;  %v290_v37 = vpop.f32.mrf.mxu1 }
 0x10c   :  { %541 = vst [vmem:[#allocation8 + $0x18] sm:$0xff] %v517_v34   ;;  %545 = vst [vmem:[#allocation8 + $0x38] sm:$0xff] %v537_v35   ;;  %v512_v38 = vpack.c.bf16 %v258_v36, %v255_v30  ;;  %v532_v39 = vpack.c.bf16 %v290_v37, %v287_v31 }
 0x10e   :  { %540 = vst [vmem:[#allocation8 + $0x10] sm:$0xff] %v512_v38   ;;  %544 = vst [vmem:[#allocation8 + $0x30] sm:$0xff] %v532_v39  }
 0x10f   :  { %682 = shalt.err (!%p679_p0)
}
 0x110   :  { %444 = dma.vmem_to_hbm [thread:$0]  %s439_s1, 1024, %s737_s2, [#allocation5], %s698_s12, %s698_s12, %s699_s13  }
 0x111   :  { %695 = dma.done.wait [#allocation5], 1024  }
 0x112   :  { %696 = vsyncadd [#allocation5], 4294966272 }
 0x113   :  { %448 = vsyncpa [#allocation4], 1 }
 0x114   :  { %449 = vsyncpa [#allocation7], 1 }
 0x115   :  { %450 = vsyncpa [#allocation5], 1 }

</bundles_post_ra>
